<compile_context>
chip_gen: v5e
topology: v5e:2x2
jax: 0.10.0
libtpu: 0.0.40
codegen_flags: <defaults>
</compile_context>

<pallas_src>
import numpy as np
import jax
import jax.numpy as jnp
from jax.experimental import pallas as pl
from jax.experimental.pallas import tpu as pltpu


# --------------------------------------------------------------------------
# Kernel
# --------------------------------------------------------------------------
def _heatmap_loss_kernel(hm_ref, coord_ref, kp_ref, valid_ref, out_ref):
    """One grid step = one block of rows (each row is a flattened (n,k) heatmap).

    hm_ref   : (rows, HW)   f32  heatmap logits for this row block
    coord_ref: (2,   HW)    f32  row 0 = x coords (i % W), row 1 = y coords (i // W)
    kp_ref   : (rows, 2)    f32  ground-truth (x, y) per row
    valid_ref: (rows, 1)    f32  1.0 for real rows, 0.0 for padding rows
    out_ref  : (1, 8, 128)  f32  per-stack loss accumulator (lane-dense slab)
    """
    r = pl.program_id(1)

    # Zero the resident per-stack accumulator at the first reduction step.
    @pl.when(r == 0)
    def _():
        out_ref[...] = jnp.zeros_like(out_ref)

    hm = hm_ref[...]                                        # (rows, HW)

    # Numerically stable softmax; exp is computed exactly ONCE and reused for
    # the denominator and both weighted sums (single EUP pass).
    row_max = jnp.max(hm, axis=-1, keepdims=True)           # (rows, 1)   XLU
    p = jnp.exp(hm - row_max)                               # (rows, HW)  EUP
    denom = jnp.sum(p, axis=-1, keepdims=True)              # (rows, 1)   XLU
    inv_denom = pl.reciprocal(denom, approx=True)           # EUP vrcp (cheap)

    coords = coord_ref[...]                                 # (2, HW), resident
    xs = coords[0:1, :]                                     # (1, HW)
    ys = coords[1:2, :]

    # Soft-argmax expectation kept on VPU (mul) + XLU (reduce); no MXU.
    ex = jnp.sum(p * xs, axis=-1, keepdims=True) * inv_denom   # (rows, 1)
    ey = jnp.sum(p * ys, axis=-1, keepdims=True) * inv_denom   # (rows, 1)

    kp = kp_ref[...]                                        # (rows, 2)
    valid = valid_ref[...]                                  # (rows, 1)
    l1 = (jnp.abs(ex - kp[:, 0:1]) + jnp.abs(ey - kp[:, 1:2])) * valid

    # Accumulate partial L1 sum into the resident slab; only written back to
    # HBM once per stack (no per-step masked stores of a 2-wide output).
    out_ref[...] += jnp.sum(l1)


# --------------------------------------------------------------------------
# Wrapper
# --------------------------------------------------------------------------
def _choose_rows_per_block(nk, hw, block_bytes_budget=8 * 1024 * 1024):
    """Largest multiple-of-8 row count whose f32 input block fits the budget.

    Sized so double-buffered input blocks + in-kernel temporaries stay well
    inside the default 32 MiB scoped VMEM, which also fits v7x's smaller
    64 MiB physical VMEM (rows_per_block is a function of H*W).
    """
    rows = block_bytes_budget // (hw * 4)
    rows = max(8, (rows // 8) * 8)
    rows = min(rows, 512)
    nk_pad8 = ((nk + 7) // 8) * 8
    return min(rows, nk_pad8)


def heatmap_loss_pallas(hm_preds, keypoints):
    """Pallas forward of HeatmapLoss (list branch).

    hm_preds : list of S arrays, each [N, K, H, W]
    keypoints: [N, K, 2] float32 (x, y), already scaled by dest_size / imsize
    Returns  : dict {'hmloss_{i}': scalar}, i = S-1 .. 0 (as in the module)
    """
    if not isinstance(hm_preds, (list, tuple)):
        hm_preds = [hm_preds]
    S = len(hm_preds)
    N, K, H, W = hm_preds[0].shape
    HW = H * W
    NK = N * K

    rows = _choose_rows_per_block(NK, HW)
    nk_pad = ((NK + rows - 1) // rows) * rows
    n_row_blocks = nk_pad // rows

    # Lane-dense layout: every (n, k) heatmap becomes one [HW] row.
    hm = jnp.stack([h.astype(jnp.float32) for h in hm_preds]).reshape(S, NK, HW)
    kp = keypoints.astype(jnp.float32).reshape(NK, 2)
    valid = jnp.ones((NK, 1), jnp.float32)
    if nk_pad != NK:
        pad = nk_pad - NK
        hm = jnp.pad(hm, ((0, 0), (0, pad), (0, 0)))
        kp = jnp.pad(kp, ((0, pad), (0, 0)))
        valid = jnp.pad(valid, ((0, pad), (0, 0)))

    # Constant coordinate planes for the flattened index: x = i % W, y = i // W.
    xs = jnp.tile(jnp.arange(W, dtype=jnp.float32), H)
    ys = jnp.repeat(jnp.arange(H, dtype=jnp.float32), W)
    coords = jnp.stack([xs, ys], axis=0)                    # (2, HW)

    out = pl.pallas_call(
        _heatmap_loss_kernel,
        out_shape=jax.ShapeDtypeStruct((S, 8, 128), jnp.float32),
        grid_spec=pltpu.PrefetchScalarGridSpec(
            num_scalar_prefetch=0,
            grid=(S, n_row_blocks),
            in_specs=[
                # heatmaps: (S, NK_pad, HW), one (rows, HW) block per step
                pl.BlockSpec((None, rows, HW), lambda s, r: (s, r, 0)),
                # constant coordinate planes: resident (index map is constant)
                pl.BlockSpec((2, HW), lambda s, r: (0, 0)),
                # keypoints and validity mask per row block
                pl.BlockSpec((rows, 2), lambda s, r: (r, 0)),
                pl.BlockSpec((rows, 1), lambda s, r: (r, 0)),
            ],
            # Per-stack accumulator slab: same block across the r (reduction)
            # axis -> stays resident in VMEM, written back once per stack.
            out_specs=pl.BlockSpec((1, 8, 128), lambda s, r: (s, 0, 0)),
        ),
        compiler_params=pltpu.CompilerParams(
            dimension_semantics=("parallel", "arbitrary")),
    )(hm, coords, kp, valid)

    # weighted_l1_loss with size_average=True divides by len(input) == N.
    losses = out[:, 0, 0] / float(N)
    return {f"hmloss_{i}": losses[i] for i in range(S - 1, -1, -1)}


# --------------------------------------------------------------------------
# Host-side glue (faithful port of np_translateKP) and pure-JAX reference
# --------------------------------------------------------------------------
def np_translate_kp(targets, N, K):
    """Host-side numpy port of np_translateKP from the PyTorch module."""
    keypoints = np.zeros((N, K, 2), dtype=np.float32)
    for bid, gt in enumerate(targets):
        for oid, kps in enumerate(gt["keypoints"]):
            for kid, kp in enumerate(kps):
                keypoints[bid, oid * K + kid, 0] = kp[0]
                keypoints[bid, oid * K + kid, 1] = kp[1]
    return keypoints


def _heatmap_loss_reference(hm_preds, keypoints):
    """Pure-JAX reference mirroring the PyTorch module exactly."""
    losses = {}
    S = len(hm_preds)
    for i in range(S - 1, -1, -1):
        hm = hm_preds[i].astype(jnp.float32)
        N, K, H, W = hm.shape
        p = jax.nn.softmax(hm.reshape(N, K, H * W), axis=-1).reshape(N, K, H, W)
        accu_x = (p.sum(axis=2) * jnp.arange(W, dtype=jnp.float32)).sum(axis=2)
        accu_y = (p.sum(axis=3) * jnp.arange(H, dtype=jnp.float32)).sum(axis=2)
        pred = jnp.stack([accu_x, accu_y], axis=-1)          # (N, K, 2)
        losses[f"hmloss_{i}"] = jnp.abs(pred - keypoints).sum() / N
    return losses


# --------------------------------------------------------------------------
# Demo / self-check
# --------------------------------------------------------------------------
if __name__ == "__main__":
    # Small shapes consistent with the module: S stacks of [N, K, H, W].
    S, N, K, H, W = 2, 2, 4, 16, 16
    imsize, dest_size = 64, 16                  # ratio = dest_size / imsize
    ratio = float(dest_size) / float(imsize)

    key = jax.random.PRNGKey(0)
    keys = jax.random.split(key, S + 1)
    hm_preds = [2.0 * jax.random.normal(keys[i], (N, K, H, W), jnp.float32)
                for i in range(S)]

    # targets in the structure HeatmapLoss.forward consumes (one object/image).
    raw_kp = jax.random.uniform(keys[S], (N, 1, K, 2), jnp.float32,
                                minval=0.0, maxval=float(imsize))
    targets = [{"keypoints": np.asarray(raw_kp[b])} for b in range(N)]
    keypoints = jnp.asarray(np_translate_kp(targets, N, K) * ratio, jnp.float32)

    loss_dict = heatmap_loss_pallas(hm_preds, keypoints)
    jax.block_until_ready(loss_dict)

    ref_dict = _heatmap_loss_reference(hm_preds, keypoints)
    for name in loss_dict:
        got = float(loss_dict[name])
        want = float(ref_dict[name])
        if (not np.isfinite(got)) or abs(got - want) > 5e-2 + 2e-2 * abs(want):
            raise AssertionError(f"{name}: pallas={got} ref={want}")

    print("KERNEL_OK")
</pallas_src>

<mosaic_0001>
module attributes {stable_mosaic.version = 11 : i64} {
  func.func @_heatmap_loss_kernel(%arg0: i32, %arg1: i32, %arg2: memref<1x8x256xf32, #tpu.memory_space<vmem>>, %arg3: memref<2x256xf32, #tpu.memory_space<vmem>>, %arg4: memref<8x2xf32, #tpu.memory_space<vmem>>, %arg5: memref<8x1xf32, #tpu.memory_space<vmem>>, %arg6: memref<1x8x128xf32, #tpu.memory_space<vmem>>) attributes {dimension_semantics = [#tpu.dimension_semantics<parallel>, #tpu.dimension_semantics<arbitrary>], iteration_bounds = array<i64: 2, 1>, scalar_prefetch = 0 : i64, scratch_operands = 0 : i64, tpu.core_type = #tpu.core_type<tc>, window_params = [{transform_indices = @transform_0, window_bounds = array<i64: 1, 8, 256>}, {pipeline_mode = #tpu.pipeline_mode<synchronous>, transform_indices = @transform_1, window_bounds = array<i64: 2, 256>}, {transform_indices = @transform_2, window_bounds = array<i64: 8, 2>}, {transform_indices = @transform_3, window_bounds = array<i64: 8, 1>}, {transform_indices = @transform_4, window_bounds = array<i64: 1, 8, 128>}]} {
    %c0_i32 = arith.constant 0 : i32
    %0 = arith.cmpi eq, %arg1, %c0_i32 : i32
    %1 = arith.extui %0 : i1 to i32
    %c0_i32_0 = arith.constant 0 : i32
    %2 = arith.cmpi ne, %1, %c0_i32_0 : i32
    scf.if %2 {
      %cst_19 = arith.constant 0.000000e+00 : f32
      %44 = vector.broadcast %cst_19 : f32 to vector<1x8x128xf32>
      %c0_20 = arith.constant 0 : index
      %c0_21 = arith.constant 0 : index
      %c0_22 = arith.constant 0 : index
      %45 = vector.load %arg6[%c0_20, %c0_21, %c0_22] : memref<1x8x128xf32, #tpu.memory_space<vmem>>, vector<1x8x128xf32>
      tpu.vector_store %arg6[%c0_20, %c0_21, %c0_22], %44 {strides = array<i32>} : memref<1x8x128xf32, #tpu.memory_space<vmem>>, vector<1x8x128xf32>,
    } else {
    }
    %c0 = arith.constant 0 : index
    %c0_1 = arith.constant 0 : index
    %c0_2 = arith.constant 0 : index
    %3 = vector.load %arg2[%c0, %c0_1, %c0_2] : memref<1x8x256xf32, #tpu.memory_space<vmem>>, vector<1x8x256xf32>
    %4 = vector.shape_cast %3 : vector<1x8x256xf32> to vector<8x256xf32>
    %cst = arith.constant dense<0xFF800000> : vector<8xf32>
    %5 = vector.multi_reduction <maximumf>, %4, %cst [1] : vector<8x256xf32> to vector<8xf32>
    %6 = vector.shape_cast %5 : vector<8xf32> to vector<8x1xf32>
    %7 = vector.broadcast %6 : vector<8x1xf32> to vector<8x256xf32>
    %8 = arith.subf %4, %7 : vector<8x256xf32>
    %9 = math.exp %8 : vector<8x256xf32>
    %cst_3 = arith.constant dense<0.000000e+00> : vector<8xf32>
    %10 = vector.multi_reduction <add>, %9, %cst_3 [1] : vector<8x256xf32> to vector<8xf32>
    %11 = vector.shape_cast %10 : vector<8xf32> to vector<8x1xf32>
    %12 = tpu.reciprocal %11 {approx = true} : vector<8x1xf32> -> vector<8x1xf32>
    %c0_4 = arith.constant 0 : index
    %c0_5 = arith.constant 0 : index
    %13 = vector.load %arg3[%c0_4, %c0_5] : memref<2x256xf32, #tpu.memory_space<vmem>>, vector<2x256xf32>
    %14 = vector.extract_strided_slice %13 {offsets = [0, 0], sizes = [1, 256], strides = [1, 1]} : vector<2x256xf32> to vector<1x256xf32>
    %15 = vector.extract_strided_slice %13 {offsets = [1, 0], sizes = [1, 256], strides = [1, 1]} : vector<2x256xf32> to vector<1x256xf32>
    %16 = vector.broadcast %14 : vector<1x256xf32> to vector<8x256xf32>
    %17 = arith.mulf %9, %16 : vector<8x256xf32>
    %cst_6 = arith.constant dense<0.000000e+00> : vector<8xf32>
    %18 = vector.multi_reduction <add>, %17, %cst_6 [1] : vector<8x256xf32> to vector<8xf32>
    %19 = vector.shape_cast %18 : vector<8xf32> to vector<8x1xf32>
    %20 = arith.mulf %19, %12 : vector<8x1xf32>
    %21 = vector.broadcast %15 : vector<1x256xf32> to vector<8x256xf32>
    %22 = arith.mulf %9, %21 : vector<8x256xf32>
    %cst_7 = arith.constant dense<0.000000e+00> : vector<8xf32>
    %23 = vector.multi_reduction <add>, %22, %cst_7 [1] : vector<8x256xf32> to vector<8xf32>
    %24 = vector.shape_cast %23 : vector<8xf32> to vector<8x1xf32>
    %25 = arith.mulf %24, %12 : vector<8x1xf32>
    %c0_8 = arith.constant 0 : index
    %c0_9 = arith.constant 0 : index
    %26 = vector.load %arg4[%c0_8, %c0_9] : memref<8x2xf32, #tpu.memory_space<vmem>>, vector<8x2xf32>
    %c0_10 = arith.constant 0 : index
    %c0_11 = arith.constant 0 : index
    %27 = vector.load %arg5[%c0_10, %c0_11] : memref<8x1xf32, #tpu.memory_space<vmem>>, vector<8x1xf32>
    %28 = vector.extract_strided_slice %26 {offsets = [0, 0], sizes = [8, 1], strides = [1, 1]} : vector<8x2xf32> to vector<8x1xf32>
    %29 = arith.subf %20, %28 : vector<8x1xf32>
    %30 = math.absf %29 : vector<8x1xf32>
    %31 = vector.extract_strided_slice %26 {offsets = [0, 1], sizes = [8, 1], strides = [1, 1]} : vector<8x2xf32> to vector<8x1xf32>
    %32 = arith.subf %25, %31 : vector<8x1xf32>
    %33 = math.absf %32 : vector<8x1xf32>
    %34 = arith.addf %30, %33 : vector<8x1xf32>
    %35 = arith.mulf %34, %27 : vector<8x1xf32>
    %c0_12 = arith.constant 0 : index
    %c0_13 = arith.constant 0 : index
    %c0_14 = arith.constant 0 : index
    %36 = vector.load %arg6[%c0_12, %c0_13, %c0_14] : memref<1x8x128xf32, #tpu.memory_space<vmem>>, vector<1x8x128xf32>
    %37 = vector.shape_cast %35 : vector<8x1xf32> to vector<1x8x1xf32>
    %cst_15 = arith.constant dense<0.000000e+00> : vector<1xf32>
    %38 = vector.multi_reduction <add>, %37, %cst_15 [1, 2] : vector<1x8x1xf32> to vector<1xf32>
    %39 = vector.shape_cast %38 : vector<1xf32> to vector<1x1x1xf32>
    %40 = vector.extract %39[0, 0, 0] : f32 from vector<1x1x1xf32>
    %41 = vector.broadcast %40 : f32 to vector<1x8x128xf32>
    %42 = arith.addf %36, %41 : vector<1x8x128xf32>
    %c0_16 = arith.constant 0 : index
    %c0_17 = arith.constant 0 : index
    %c0_18 = arith.constant 0 : index
    %43 = vector.load %arg6[%c0_16, %c0_17, %c0_18] : memref<1x8x128xf32, #tpu.memory_space<vmem>>, vector<1x8x128xf32>
    tpu.vector_store %arg6[%c0_16, %c0_17, %c0_18], %42 {strides = array<i32>} : memref<1x8x128xf32, #tpu.memory_space<vmem>>, vector<1x8x128xf32>,
    return
  }
  func.func @transform_0(%arg0: i32, %arg1: i32) -> (i32, i32, i32) {
    %c0_i32 = arith.constant 0 : i32
    %c0_i32_0 = arith.constant 0 : i32
    return %arg0, %arg1, %c0_i32 : i32, i32, i32
  }
  func.func @transform_1(%arg0: i32, %arg1: i32) -> (i32, i32) {
    %c0_i32 = arith.constant 0 : i32
    %c0_i32_0 = arith.constant 0 : i32
    %c0_i32_1 = arith.constant 0 : i32
    return %c0_i32, %c0_i32_0 : i32, i32
  }
  func.func @transform_2(%arg0: i32, %arg1: i32) -> (i32, i32) {
    %c0_i32 = arith.constant 0 : i32
    %c0_i32_0 = arith.constant 0 : i32
    return %arg1, %c0_i32 : i32, i32
  }
  func.func @transform_3(%arg0: i32, %arg1: i32) -> (i32, i32) {
    %c0_i32 = arith.constant 0 : i32
    %c0_i32_0 = arith.constant 0 : i32
    return %arg1, %c0_i32 : i32, i32
  }
  func.func @transform_4(%arg0: i32, %arg1: i32) -> (i32, i32, i32) {
    %c0_i32 = arith.constant 0 : i32
    %c0_i32_0 = arith.constant 0 : i32
    %c0_i32_1 = arith.constant 0 : i32
    return %arg0, %c0_i32, %c0_i32_0 : i32, i32, i32
  }
}

</mosaic_0001>

<bundles_post_ra>
// kernel: tpu_custom_call.1
= control target key start
LH: loop header
LB: loop body
LE: loop exit
PB: predicated region body
PF: predicated region fallthrough
CT: control target
= control target key end

     0   :  { %9 = vsyncpa [#allocation3], 0  ;;  %s825_s0 = inlined_call_operand.hbm [shape: f32[2,8,256], index: 0, kind: input, shape index: {}]   ;;  %s826_s1 = inlined_call_operand.vmem [shape: f32[2,256], index: 1, kind: input, shape index: {}]   ;;  %s827_s2 = inlined_call_operand.vmem [shape: f32[8,2], index: 2, kind: input, shape index: {}]   ;;  %s828_s3 = inlined_call_operand.vmem [shape: f32[8,1], index: 3, kind: input, shape index: {}]   ;;  %s829_s4 = inlined_call_operand.hbm [shape: f32[2,8,128], index: 4, kind: output, shape index: {}]  }
   0x1   :  { %11 = vsyncpa [#allocation3 + $0x1], 0 }
   0x2   :  { %12 = vsyncpa [#allocation4], 0 }
   0x3   :  { %14 = vsyncpa [#allocation4 + $0x1], 0  ;;  %s695_s15 = smov 0   ;;  %s697_s16 = smov 0  }
   0x4   :  { %s699_s17 = smov 0   ;;  %s701_s18 = smov 0  }
   0x5   :  { %s703_s19 = smov 0   ;;  %s705_s20 = smov 0  }
   0x6 LB: > { %s466_s21 = sadd.s32 4294967295, %s667_s20   ;;  %s467_s22 = sadd.s32 4294967294, %s667_s20   ;;  %s667_s20 = sphi %s705_s20, %s20_s20   ;;  %s663_s19 = sphi %s703_s19, %s838_s19   ;;  %s659_s18 = sphi %s701_s18, %s837_s18   ;;  %s655_s17 = sphi %s699_s17, %s836_s17   ;;  %s651_s16 = sphi %s697_s16, %s835_s16   ;;  %s647_s15 = sphi %s695_s15, %s834_s15  }
   0x7   : > { %s32_s23 = sadd.s32 1, %s663_s19  ;;  %s41_s24 = sadd.s32 1, %s655_s17 }
   0x8   : > { %p34_p0 = scmp.ge.s32.totalorder %s32_s23, 2  ;;  %p48_p1 = scmp.ne.s32.totalorder %s655_s17, %s651_s16 }
   0x9   : > { %p49_p2 = scmp.eq.s32.totalorder %s667_s20, 0  ;;  %p54_p3 = scmp.ne.s32.totalorder %s651_s16, %s647_s15 }
   0xa   : > { %s840_s23 = smov (%p34_p0, %s32_s23), 0  ;;  %p55_p5 = scmp.eq.s32.totalorder %s466_s21, 0 }
   0xb   : > { %p736_p4 = por %p49_p2, %p48_p1  ;;  %s36_s26 = ssub.s32 %s663_s19, %s840_s23 }
   0xc   : > { %p151_p6 = scmp.eq.s32.totalorder %s466_s21, 1  ;;  %p39_p7 = scmp.eq.s32.totalorder %s36_s26, 0 }
   0xd   : > { %p742_p8 = por %p55_p5, %p54_p3  ;;  %p157_p10 = scmp.eq.s32.totalorder %s467_s22, 1 }
   0xe   : > { %p746_p9 = por %p151_p6, %p48_p1  ;;  %p471_p12 = scmp.ge.s32.totalorder %s667_s20, 2 }
   0xf   : > { %s751_s29 = scalar_select %p39_p7, %s655_s17, %s41_s24  }
  0x10   : > { %p753_p11 = por %p157_p10, %p54_p3  ;;  %p497_p13 = scmp.lt.s32.totalorder %s667_s20, 2 }
  0x11   : > { %s194_s5 = sand.u32 1, %s655_s17   ;;  %s482_s7 = sshll.u32 %s663_s19, 4 }
  0x12   : > { %s472_s6 = sshll.u32 %s194_s5, 4  ;;  %s205_s10 = scalar_lea.hbm %s825_s0, %s482_s7 }
  0x13   : > { %s198_s11 = scalar_lea.vmem [#allocation2], %s472_s6  ;;  %s207_s13 = sshll.u32 %s205_s10, 4  ;;  %s208_s13 = int_to_ptr.hbm [resolvable:$true] %s207_s13 }
  0x14   : > { %s209_s12 = sshll.u32 %s198_s11, 4  ;;  %p490_p0 = pnand %p497_p13, %p736_p4  ;;  %s210_s12 = int_to_ptr.vmem [resolvable:$true] %s209_s12 }
  0x15   : > { %p475_p1 = scmp.ge.s32.totalorder %s667_s20, 1  ;;  %p214_p2 = scmp.lt.s32.totalorder %s667_s20, 3 }
  0x16   : > { %s195_s14 = scalar_lea.sflag [#allocation3], %s194_s5 }
  0x17   : > { %492 = dma.hbm_to_vmem [thread:$0]  (!%p490_p0), %s208_s13, 256, %s210_s12, %s195_s14  }
  0x18   : > { %p215_p3 = pnand %p475_p1, %p214_p2 }
  0x19   : > { %s769_s21 = sand.u32 (!%p215_p3), 1, %s651_s16  }
  0x1a   : > { %218 = sbr.rel (%p215_p3) target bundleno = 572 (0x23c), region = 36  ;;  %s476_s22 = sshll.u32 (!%p215_p3), %s769_s21, 4 }
  0x1b   : > { %s221_s24 = scalar_lea.sflag (!%p215_p3), [#allocation3], %s769_s21  ;;  %s224_s26 = scalar_lea.vmem (!%p215_p3), [#allocation2], %s476_s22 }
  0x1f   : > { %638 = dma.done.wait (%p742_p8), %s221_s24, 256  }
  0x20   : > { %640 = vsyncadd (%p742_p8), %s221_s24, 4294967040  ;;  %v271_v0 = vld [vmem:[%s224_s26] sm:$0xff]  ;;  %v272_v1 = vld [vmem:[%s224_s26 + $0x8] sm:$0xff]  ;;  %s669_s7 = smov 127   ;;  %vm325_vm0 = vcmask 7168   ;;  %s477_s10 = sshll.u32 %s769_s21, 3 }
  0x21   : > { %v273_v2 = vmax.f32 %v271_v0, %v272_v1  ;;  %v286_v6 = vld [vmem:[%s826_s1] sm:$0xf]  ;;  %s479_s11 = sshll.u32 %s659_s18, 3  ;;  %s257_s22 = scalar_lea.vmem [#allocation5], %s477_s10 }
  0x22   : > { %v300_v9 = vperm.slane %v286_v6, 1  ;;  %v301_v10 = vperm.slane %v286_v6, 3  ;;  %v288_v14 = vperm.slane %v286_v6, 0  ;;  %v289_v15 = vperm.slane %v286_v6, 2  ;;  %v312_v29 = vld [vmem:[%s827_s2] sm:$0xff]  ;;  %s350_s14 = scalar_lea.hbm %s829_s4, %s479_s11  ;;  %s352_s24 = sshll.u32 %s257_s22, 4  ;;  %s353_s24 = int_to_ptr.vmem [resolvable:$true] %s352_s24 }
  0x23   : > { %274 = vmax.xlane.f32.xlu0 %v273_v2  ;;  %v313_v38 = vld [vmem:[%s828_s3] sm:$0xff]  ;;  %s354_s26 = sshll.u32 %s350_s14, 4  ;;  %s340_s5 = scalar_lea.sflag [#allocation4], %s769_s21  ;;  %s355_s26 = int_to_ptr.hbm [resolvable:$true] %s354_s26 }
  0x24   : > { %v304_v11 = vperm.slane %v300_v9, 1  ;;  %v305_v12 = vperm.slane %v301_v10, 1  ;;  %v292_v21 = vperm.slane %v288_v14, 0  ;;  %v293_v22 = vperm.slane %v289_v15, 0  ;;  %s599_s27 = sshra.s32 %s355_s26, 4  ;;  %s605_s8 = scalar_lea.hbm %s829_s4, 16  ;;  %s600_s27 = int_to_ptr.hbm [resolvable:$true] %s599_s27 }
  0x25   : > { %s601_s6 = scalar_lea.hbm %s600_s27, 8  ;;  %p606_p7 = scmp.lt.s32.totalorder %s600_s27, %s829_s4 }
  0x26   : > { %p602_p4 = scmp.ne.s32.totalorder %s600_s27, %s601_s6  ;;  %p607_p8 = scmp.lt.s32.totalorder %s605_s8, %s601_s6 }
  0x28   : > { %p603_p5 = pnand %p602_p4, %p746_p9  ;;  %p608_p10 = por %p607_p8, %p606_p7 }
  0x2a   : > { %p604_p6 = pneg %p603_p5 }
  0x2c   : > { %p609_p13 = pnand %p608_p10, %p604_p6 }
  0x96   : > { %v275_v3 = vpop.xlane.xlu0 %274 }
  0x97   : > { %v276_v4 = vsub.f32 %v271_v0, %v275_v3  ;;  %v277_v5 = vsub.f32 %v272_v1, %v275_v3 }
  0x99   : > { %v278_v7 = vmul.f32 1.442695, %v276_v4  ;;  %v280_v8 = vmul.f32 1.442695, %v277_v5 }
  0x9b   : > { %549 = vpow2.f32 %v278_v7 }
  0x9c   : > { %551 = vpow2.f32 %v280_v8 }
  0xa1   : > { %v550_v13 = vpop.eup %549 }
  0xa2   : > { %v552_v16 = vpop.eup %551  ;;  %v306_v17 = vmul.f32 %v550_v13, %v304_v11  ;;  %v294_v23 = vmul.f32 %v550_v13, %v292_v21 }
  0xa3   : > { %v282_v18 = vadd.f32 %v552_v16, %v550_v13  ;;  %v307_v19 = vmul.f32 %v552_v16, %v305_v12  ;;  %v295_v24 = vmul.f32 %v552_v16, %v293_v22 }
  0xa5   : > { %283 = vadd.xlane.f32.xlu0 %v282_v18  ;;  %v308_v20 = vadd.f32 %v307_v19, %v306_v17  ;;  %v296_v25 = vadd.f32 %v295_v24, %v294_v23 }
  0xa7   : > { %309 = vadd.xlane.f32.xlu1 %v308_v20 }
  0xaf   : > { %297 = vadd.xlane.f32.xlu1 %v296_v25 }
 0x118   : > { %v284_v26 = vpop.xlane.xlu0 %283 }
 0x119   : > { %553 = vrcp.f32 %v284_v26 }
 0x11a   : > { %v310_v27 = vpop.xlane.xlu1 %309 }
 0x11f   : > { %v554_v28 = vpop.eup %553 }
 0x120   : > { %v311_v30 = vmul.f32 %v554_v28, %v310_v27 }
 0x122   : > { %v298_v31 = vpop.xlane.xlu1 %297  ;;  %v316_v32 = vsub.f32 %v311_v30, %v312_v29 }
 0x123   : > { %v299_v33 = vmul.f32 %v554_v28, %v298_v31 }
 0x124   : > { %v317_v34 = vand.u32 2147483647, %v316_v32 }
 0x125   : > { %v314_v35 = vsub.f32 %v299_v33, %v312_v29 }
 0x126   : > { %319 = vrot.lane.b32.xlu2 %v317_v34, %s669_s7 }
 0x127   : > { %v315_v36 = vand.u32 2147483647, %v314_v35 }
 0x180   : > { %v320_v37 = vpop.permute.xlu2 %319 }
 0x181   : > { %v322_v39 = vadd.f32 %v320_v37, %v315_v36 }
 0x183   : > { %v323_v40 = vmul.f32 %v322_v39, %v313_v38 }
 0x185   : > { %v326_v41 = vsel %vm325_vm0, %v323_v40, 0.0 }
 0x186   : > { %327 = vadd.xlane.f32.xlu2 %v326_v41 }
 0x1f9   : > { %v328_v42 = vpop.xlane.xlu2 %327 }
 0x1fa   : > { %v329_v43 = vrot.slane %v328_v42, 4 }
 0x1fc   : > { %v330_v44 = vadd.f32 %v329_v43, %v328_v42 }
 0x1fe   : > { %v331_v45 = vrot.slane %v330_v44, 2 }
 0x200   : > { %v332_v46 = vadd.f32 %v331_v45, %v330_v44 }
 0x202   : > { %v333_v47 = vrot.slane %v332_v46, 1 }
 0x204   : > { %v334_v48 = vadd.f32 %v333_v47, %v332_v46 }
 0x206   : > { %483 = vpush %v334_v48 }
 0x237   : > { %s484_s25 = spop %483 }
 0x238   : > { %v336_v49 = vstv %s484_s25 }
 0x239   : > { %338 = vst [vmem:[%s257_s22] sm:$0xff] %v336_v49 }
 0x23a   : > { %612 = shalt.err (!%p609_p13)
}
 0x23b   : > { %487 = dma.vmem_to_hbm [thread:$0]  (%p746_p9), %s353_s24, 128, %s355_s26, %s340_s5  }
 0x23c PF: > { %s366_s21 = sand.u32 1, %s647_s15   ;;  %p494_p0 = pnand %p471_p12, %p753_p11 }
 0x23d   : > { %s367_s11 = scalar_lea.sflag [#allocation4], %s366_s21 }
 0x23e   : > { %p495_p1 = pneg %p494_p0 }
 0x240   : > { %642 = dma.done.wait (%p495_p1), %s367_s11, 128  }
 0x241   : > { %644 = vsyncadd (%p495_p1), %s367_s11, 4294967168  ;;  %s20_s20 = sadd.s32 1, %s667_s20   ;;  %s834_s15 = smov %s651_s16 }
 0x242   : > { %p17_p2 = scmp.ge.s32.totalorder %s20_s20, 4   ;;  %s835_s16 = smov %s655_s17 }
 0x243   : > { %s836_s17 = smov %s751_s29  ;;  %s837_s18 = smov %s663_s19 }
 0x244   : > { %s838_s19 = smov %s840_s23  ;;  %19 = sbr.rel (!%p17_p2) target bundleno = 6 (0x6), region = 91 }
 0x249   :  { %373 = vsyncpa [#allocation3], 1 }
 0x24a   :  { %375 = vsyncpa [#allocation3 + $0x1], 1 }
 0x24b   :  { %376 = vsyncpa [#allocation4], 1 }
 0x24c   :  { %378 = vsyncpa [#allocation4 + $0x1], 1 }

</bundles_post_ra>
